<compile_context>
chip_gen: v7x
topology: tpu7x:2x2x1
jax: 0.10.0
libtpu: 0.0.40
codegen_flags: <defaults>
</compile_context>

<pallas_src>
import jax
import jax.numpy as jnp
from jax.experimental import pallas as pl
from jax.experimental.pallas import tpu as pltpu


def mlp_q_kernel(obs_ref, act_ref, w1o_ref, w1a_ref, b1_ref,
                 w2_ref, b2_ref, w3_ref, b3_ref, out_ref):
    # Layer 1: cat([obs, act]) @ W1 + b1, computed as a split matmul.
    obs = obs_ref[...].astype(jnp.bfloat16)
    act = act_ref[...].astype(jnp.bfloat16)
    h = (jnp.dot(obs, w1o_ref[...], preferred_element_type=jnp.float32)
         + jnp.dot(act, w1a_ref[...], preferred_element_type=jnp.float32)
         + b1_ref[...])
    h = jnp.maximum(h, 0.0)

    # Layer 2: Linear + ReLU.
    h = jnp.dot(h.astype(jnp.bfloat16), w2_ref[...],
                preferred_element_type=jnp.float32) + b2_ref[...]
    h = jnp.maximum(h, 0.0)

    # Output layer: Linear + Identity (qp='q' forces Identity output activation).
    q = jnp.dot(h.astype(jnp.bfloat16), w3_ref[...],
                preferred_element_type=jnp.float32) + b3_ref[...]

    # (tile_b, 1) column -> (1, tile_b) row: lane-dense store + contiguous
    # write-back DMA instead of masked 1-lane-wide stores.
    out_ref[...] = q.reshape(out_ref.shape)


def _round_up(x, m):
    return (x + m - 1) // m * m


def _cdiv(a, b):
    return -(-a // b)


def _select_tiling(batch, tile_b_max, two_step_threshold=1024):
    """Pick (tile_b, n_steps): big tiles, <=8*n_steps-1 rows of padding,
    and >=2 steps for mid/large batches so both v7x TensorCores get work."""
    tile_b_max = max(8, _round_up(tile_b_max, 8))
    n_steps = _cdiv(batch, tile_b_max)
    if n_steps == 1 and batch >= two_step_threshold:
        n_steps = 2
    tile_b = _round_up(_cdiv(batch, n_steps), 8)
    return tile_b, n_steps


def mlp_q_forward(obs, act, params, *, tile_b_max=2048):
    """obs: [B, obs_dim], act: [B, act_dim] (f32 or bf16). Returns q [B] f32."""
    w1o, w1a, b1, w2, b2, w3, b3 = params
    B, obs_dim = obs.shape
    act_dim = act.shape[1]

    tile_b, n_steps = _select_tiling(B, tile_b_max)
    b_pad = tile_b * n_steps
    if b_pad != B:
        obs = jnp.pad(obs, ((0, b_pad - B), (0, 0)))
        act = jnp.pad(act, ((0, b_pad - B), (0, 0)))

    # Weights/biases: constant block index -> resident in VMEM across the grid.
    def resident(shape):
        return pl.BlockSpec(shape, lambda i: (0, 0))

    out = pl.pallas_call(
        mlp_q_kernel,
        out_shape=jax.ShapeDtypeStruct((n_steps, tile_b), jnp.float32),
        grid_spec=pltpu.PrefetchScalarGridSpec(
            num_scalar_prefetch=0,
            grid=(n_steps,),
            in_specs=[
                pl.BlockSpec((tile_b, obs_dim), lambda i: (i, 0)),
                pl.BlockSpec((tile_b, act_dim), lambda i: (i, 0)),
                resident(w1o.shape), resident(w1a.shape), resident(b1.shape),
                resident(w2.shape), resident(b2.shape),
                resident(w3.shape), resident(b3.shape),
            ],
            out_specs=pl.BlockSpec((1, tile_b), lambda i: (i, 0)),
        ),
        compiler_params=pltpu.CompilerParams(
            dimension_semantics=("parallel",),
        ),
    )(obs, act, w1o, w1a, b1, w2, b2, w3, b3)

    return out.reshape(-1)[:B]


def init_linear(key, fan_in, fan_out):
    """Mimics torch.nn.Linear default init U(-1/sqrt(in), 1/sqrt(in))."""
    kw, kb = jax.random.split(key)
    bound = 1.0 / jnp.sqrt(jnp.float32(fan_in))
    # stored as [in, out] (transposed vs torch's [out, in]) so the kernel does x @ W
    w = jax.random.uniform(kw, (fan_in, fan_out), jnp.float32, -bound, bound)
    b = jax.random.uniform(kb, (1, fan_out), jnp.float32, -bound, bound)
    return w, b


def prepare_params(w1, b1, w2, b2, w3, b3, obs_dim):
    """One-time param prep: split W1 for the folded concat, cast weights to bf16.
    NOTE: bf16 MXU operands (f32 accumulate) are an intentional precision change
    vs the f32 PyTorch module (~1e-2 relative error), fine for a Q-critic."""
    w1o = w1[:obs_dim].astype(jnp.bfloat16)
    w1a = w1[obs_dim:].astype(jnp.bfloat16)
    return (w1o, w1a, b1,
            w2.astype(jnp.bfloat16), b2,
            w3.astype(jnp.bfloat16), b3)


def ref_forward(obs, act, params):
    """Pure-JAX reference with the same bf16 MXU operands / f32 accumulation."""
    w1o, w1a, b1, w2, b2, w3, b3 = params
    ob = obs.astype(jnp.bfloat16)
    ab = act.astype(jnp.bfloat16)
    h = (jnp.dot(ob, w1o, preferred_element_type=jnp.float32)
         + jnp.dot(ab, w1a, preferred_element_type=jnp.float32) + b1)
    h = jnp.maximum(h, 0.0)
    h = jnp.dot(h.astype(jnp.bfloat16), w2,
                preferred_element_type=jnp.float32) + b2
    h = jnp.maximum(h, 0.0)
    q = jnp.dot(h.astype(jnp.bfloat16), w3,
                preferred_element_type=jnp.float32) + b3
    return q[:, 0]


def _make_case(key, batch, obs_dim, act_dim, hidden_sizes):
    k_obs, k_act, k1, k2, k3 = jax.random.split(key, 5)
    obs = jax.random.normal(k_obs, (batch, obs_dim), jnp.float32)
    act = jax.random.normal(k_act, (batch, act_dim), jnp.float32)
    sizes = [obs_dim + act_dim] + hidden_sizes + [1]   # qp='q' sizes
    w1, b1 = init_linear(k1, sizes[0], sizes[1])
    w2, b2 = init_linear(k2, sizes[1], sizes[2])
    w3, b3 = init_linear(k3, sizes[2], sizes[3])
    params = prepare_params(w1, b1, w2, b2, w3, b3, obs_dim)
    return obs, act, params


if __name__ == "__main__":
    key = jax.random.PRNGKey(0)
    k_small, k_big = jax.random.split(key)

    # --- Small smoke test (shapes consistent with the module) ---
    batch, obs_dim, act_dim, hidden_sizes = 8, 16, 4, [32, 32]
    obs, act, params = _make_case(k_small, batch, obs_dim, act_dim, hidden_sizes)
    q = jax.block_until_ready(mlp_q_forward(obs, act, params))
    ref = ref_forward(obs, act, params)
    assert q.shape == (batch,), q.shape
    assert jnp.allclose(q, ref, atol=2e-3, rtol=2e-3), "small case mismatch"

    # --- Larger test: multi-step grid (forced 2 steps for v7x megacore),
    #     batch padding, resident weights across steps, lane-dense relayout ---
    batch2, obs_dim2, act_dim2, hidden2 = 1300, 17, 6, [64, 64]
    obs2, act2, params2 = _make_case(k_big, batch2, obs_dim2, act_dim2, hidden2)
    q2 = jax.block_until_ready(mlp_q_forward(obs2, act2, params2))
    ref2 = ref_forward(obs2, act2, params2)
    assert q2.shape == (batch2,), q2.shape
    assert jnp.allclose(q2, ref2, atol=2e-3, rtol=2e-3), "large case mismatch"

    print("KERNEL_OK")
</pallas_src>

<mosaic_0001>
module attributes {stable_mosaic.version = 11 : i64} {
  func.func @mlp_q_kernel(%arg0: i32, %arg1: memref<8x16xf32, #tpu.memory_space<vmem>>, %arg2: memref<8x4xf32, #tpu.memory_space<vmem>>, %arg3: memref<16x32xbf16, #tpu.memory_space<vmem>>, %arg4: memref<4x32xbf16, #tpu.memory_space<vmem>>, %arg5: memref<1x32xf32, #tpu.memory_space<vmem>>, %arg6: memref<32x32xbf16, #tpu.memory_space<vmem>>, %arg7: memref<1x32xf32, #tpu.memory_space<vmem>>, %arg8: memref<32x1xbf16, #tpu.memory_space<vmem>>, %arg9: memref<1x1xf32, #tpu.memory_space<vmem>>, %arg10: memref<1x8xf32, #tpu.memory_space<vmem>>) attributes {dimension_semantics = [#tpu.dimension_semantics<parallel>], iteration_bounds = array<i64: 1>, scalar_prefetch = 0 : i64, scratch_operands = 0 : i64, tpu.core_type = #tpu.core_type<tc>, window_params = [{transform_indices = @transform_0, window_bounds = array<i64: 8, 16>}, {transform_indices = @transform_1, window_bounds = array<i64: 8, 4>}, {pipeline_mode = #tpu.pipeline_mode<synchronous>, transform_indices = @transform_2, window_bounds = array<i64: 16, 32>}, {pipeline_mode = #tpu.pipeline_mode<synchronous>, transform_indices = @transform_3, window_bounds = array<i64: 4, 32>}, {pipeline_mode = #tpu.pipeline_mode<synchronous>, transform_indices = @transform_4, window_bounds = array<i64: 1, 32>}, {pipeline_mode = #tpu.pipeline_mode<synchronous>, transform_indices = @transform_5, window_bounds = array<i64: 32, 32>}, {pipeline_mode = #tpu.pipeline_mode<synchronous>, transform_indices = @transform_6, window_bounds = array<i64: 1, 32>}, {pipeline_mode = #tpu.pipeline_mode<synchronous>, transform_indices = @transform_7, window_bounds = array<i64: 32, 1>}, {pipeline_mode = #tpu.pipeline_mode<synchronous>, transform_indices = @transform_8, window_bounds = array<i64: 1, 1>}, {transform_indices = @transform_9, window_bounds = array<i64: 1, 8>}]} {
    %c0 = arith.constant 0 : index
    %c0_0 = arith.constant 0 : index
    %0 = vector.load %arg1[%c0, %c0_0] : memref<8x16xf32, #tpu.memory_space<vmem>>, vector<8x16xf32>
    %1 = arith.truncf %0 : vector<8x16xf32> to vector<8x16xbf16>
    %c0_1 = arith.constant 0 : index
    %c0_2 = arith.constant 0 : index
    %2 = vector.load %arg2[%c0_1, %c0_2] : memref<8x4xf32, #tpu.memory_space<vmem>>, vector<8x4xf32>
    %3 = arith.truncf %2 : vector<8x4xf32> to vector<8x4xbf16>
    %c0_3 = arith.constant 0 : index
    %c0_4 = arith.constant 0 : index
    %4 = vector.load %arg3[%c0_3, %c0_4] : memref<16x32xbf16, #tpu.memory_space<vmem>>, vector<16x32xbf16>
    %cst = arith.constant dense<0.000000e+00> : vector<8x32xf32>
    %5 = tpu.matmul %1, %4, %cst {dimension_numbers = #tpu.dot_dimension_numbers<[1], [0], [0], [1], [0, 0, 1, 1], [], []>} : vector<8x16xbf16>, vector<16x32xbf16>, vector<8x32xf32> -> vector<8x32xf32>
    %c0_5 = arith.constant 0 : index
    %c0_6 = arith.constant 0 : index
    %6 = vector.load %arg4[%c0_5, %c0_6] : memref<4x32xbf16, #tpu.memory_space<vmem>>, vector<4x32xbf16>
    %cst_7 = arith.constant dense<0.000000e+00> : vector<8x32xf32>
    %7 = tpu.matmul %3, %6, %cst_7 {dimension_numbers = #tpu.dot_dimension_numbers<[1], [0], [0], [1], [0, 0, 1, 1], [], []>} : vector<8x4xbf16>, vector<4x32xbf16>, vector<8x32xf32> -> vector<8x32xf32>
    %8 = arith.addf %5, %7 : vector<8x32xf32>
    %c0_8 = arith.constant 0 : index
    %c0_9 = arith.constant 0 : index
    %9 = vector.load %arg5[%c0_8, %c0_9] : memref<1x32xf32, #tpu.memory_space<vmem>>, vector<1x32xf32>
    %10 = vector.broadcast %9 : vector<1x32xf32> to vector<8x32xf32>
    %11 = arith.addf %8, %10 : vector<8x32xf32>
    %cst_10 = arith.constant 0.000000e+00 : f32
    %12 = vector.broadcast %cst_10 : f32 to vector<8x32xf32>
    %13 = arith.maximumf %11, %12 : vector<8x32xf32>
    %14 = arith.truncf %13 : vector<8x32xf32> to vector<8x32xbf16>
    %c0_11 = arith.constant 0 : index
    %c0_12 = arith.constant 0 : index
    %15 = vector.load %arg6[%c0_11, %c0_12] : memref<32x32xbf16, #tpu.memory_space<vmem>>, vector<32x32xbf16>
    %cst_13 = arith.constant dense<0.000000e+00> : vector<8x32xf32>
    %16 = tpu.matmul %14, %15, %cst_13 {dimension_numbers = #tpu.dot_dimension_numbers<[1], [0], [0], [1], [0, 0, 1, 1], [], []>} : vector<8x32xbf16>, vector<32x32xbf16>, vector<8x32xf32> -> vector<8x32xf32>
    %c0_14 = arith.constant 0 : index
    %c0_15 = arith.constant 0 : index
    %17 = vector.load %arg7[%c0_14, %c0_15] : memref<1x32xf32, #tpu.memory_space<vmem>>, vector<1x32xf32>
    %18 = vector.broadcast %17 : vector<1x32xf32> to vector<8x32xf32>
    %19 = arith.addf %16, %18 : vector<8x32xf32>
    %cst_16 = arith.constant 0.000000e+00 : f32
    %20 = vector.broadcast %cst_16 : f32 to vector<8x32xf32>
    %21 = arith.maximumf %19, %20 : vector<8x32xf32>
    %22 = arith.truncf %21 : vector<8x32xf32> to vector<8x32xbf16>
    %c0_17 = arith.constant 0 : index
    %c0_18 = arith.constant 0 : index
    %23 = vector.load %arg8[%c0_17, %c0_18] : memref<32x1xbf16, #tpu.memory_space<vmem>>, vector<32x1xbf16>
    %cst_19 = arith.constant dense<0.000000e+00> : vector<8x1xf32>
    %24 = tpu.matmul %22, %23, %cst_19 {dimension_numbers = #tpu.dot_dimension_numbers<[1], [0], [0], [1], [0, 0, 1, 1], [], []>} : vector<8x32xbf16>, vector<32x1xbf16>, vector<8x1xf32> -> vector<8x1xf32>
    %c0_20 = arith.constant 0 : index
    %c0_21 = arith.constant 0 : index
    %25 = vector.load %arg9[%c0_20, %c0_21] : memref<1x1xf32, #tpu.memory_space<vmem>>, vector<1x1xf32>
    %26 = vector.broadcast %25 : vector<1x1xf32> to vector<8x1xf32>
    %27 = arith.addf %24, %26 : vector<8x1xf32>
    %28 = vector.shape_cast %27 : vector<8x1xf32> to vector<1x8xf32>
    %c0_22 = arith.constant 0 : index
    %c0_23 = arith.constant 0 : index
    %29 = vector.load %arg10[%c0_22, %c0_23] : memref<1x8xf32, #tpu.memory_space<vmem>>, vector<1x8xf32>
    tpu.vector_store %arg10[%c0_22, %c0_23], %28 {strides = array<i32>} : memref<1x8xf32, #tpu.memory_space<vmem>>, vector<1x8xf32>,
    return
  }
  func.func @transform_0(%arg0: i32) -> (i32, i32) {
    %c0_i32 = arith.constant 0 : i32
    %c0_i32_0 = arith.constant 0 : i32
    return %arg0, %c0_i32 : i32, i32
  }
  func.func @transform_1(%arg0: i32) -> (i32, i32) {
    %c0_i32 = arith.constant 0 : i32
    %c0_i32_0 = arith.constant 0 : i32
    return %arg0, %c0_i32 : i32, i32
  }
  func.func @transform_2(%arg0: i32) -> (i32, i32) {
    %c0_i32 = arith.constant 0 : i32
    %c0_i32_0 = arith.constant 0 : i32
    %c0_i32_1 = arith.constant 0 : i32
    return %c0_i32, %c0_i32_0 : i32, i32
  }
  func.func @transform_3(%arg0: i32) -> (i32, i32) {
    %c0_i32 = arith.constant 0 : i32
    %c0_i32_0 = arith.constant 0 : i32
    %c0_i32_1 = arith.constant 0 : i32
    return %c0_i32, %c0_i32_0 : i32, i32
  }
  func.func @transform_4(%arg0: i32) -> (i32, i32) {
    %c0_i32 = arith.constant 0 : i32
    %c0_i32_0 = arith.constant 0 : i32
    %c0_i32_1 = arith.constant 0 : i32
    return %c0_i32, %c0_i32_0 : i32, i32
  }
  func.func @transform_5(%arg0: i32) -> (i32, i32) {
    %c0_i32 = arith.constant 0 : i32
    %c0_i32_0 = arith.constant 0 : i32
    %c0_i32_1 = arith.constant 0 : i32
    return %c0_i32, %c0_i32_0 : i32, i32
  }
  func.func @transform_6(%arg0: i32) -> (i32, i32) {
    %c0_i32 = arith.constant 0 : i32
    %c0_i32_0 = arith.constant 0 : i32
    %c0_i32_1 = arith.constant 0 : i32
    return %c0_i32, %c0_i32_0 : i32, i32
  }
  func.func @transform_7(%arg0: i32) -> (i32, i32) {
    %c0_i32 = arith.constant 0 : i32
    %c0_i32_0 = arith.constant 0 : i32
    %c0_i32_1 = arith.constant 0 : i32
    return %c0_i32, %c0_i32_0 : i32, i32
  }
  func.func @transform_8(%arg0: i32) -> (i32, i32) {
    %c0_i32 = arith.constant 0 : i32
    %c0_i32_0 = arith.constant 0 : i32
    %c0_i32_1 = arith.constant 0 : i32
    return %c0_i32, %c0_i32_0 : i32, i32
  }
  func.func @transform_9(%arg0: i32) -> (i32, i32) {
    %c0_i32 = arith.constant 0 : i32
    %c0_i32_0 = arith.constant 0 : i32
    return %arg0, %c0_i32 : i32, i32
  }
}

</mosaic_0001>

<bundles_post_ra>
// kernel: tpu_custom_call.1
= control target key start
LH: loop header
LB: loop body
LE: loop exit
PB: predicated region body
PF: predicated region fallthrough
CT: control target
= control target key end

     0   :  { %s496_s0 = inlined_call_operand.vmem [shape: f32[8,16], index: 0, kind: input, shape index: {}]   ;;  %s497_s1 = inlined_call_operand.vmem [shape: f32[8,4], index: 1, kind: input, shape index: {}]   ;;  %s498_s2 = inlined_call_operand.vmem [shape: bf16[16,32], index: 2, kind: input, shape index: {}]   ;;  %s499_s3 = inlined_call_operand.vmem [shape: bf16[4,32], index: 3, kind: input, shape index: {}]   ;;  %s500_s4 = inlined_call_operand.vmem [shape: f32[1,32], index: 4, kind: input, shape index: {}]   ;;  %s501_s5 = inlined_call_operand.vmem [shape: bf16[32,32], index: 5, kind: input, shape index: {}]   ;;  %s502_s6 = inlined_call_operand.vmem [shape: f32[1,32], index: 6, kind: input, shape index: {}]   ;;  %s503_s7 = inlined_call_operand.vmem [shape: bf16[32,1], index: 7, kind: input, shape index: {}]   ;;  %s504_s8 = inlined_call_operand.<no memory space> [shape: f32[1,1], index: 8, kind: input, shape index: {}]   ;;  %s505_s9 = inlined_call_operand.hbm [shape: f32[1,8], index: 9, kind: output, shape index: {}]  }
   0x1   :  { %v14_v0 = vstv %s504_s8 }
   0x2   :  { %15 = vst [vmem:[#allocation2] sm:$0x1] %v14_v0 }
   0x3   :  { %v42_v1 = vld [vmem:[%s499_s3] sm:$0x3]  ;;  %vm47_vm0 = vcmask 1041408   ;;  %v397_v2 = vmov 0.0   ;;  %vm398_vm1 = vmmov 0   ;;  %vm43_vm2 = vcmask 31744  }
   0x4   :  { %335 = vmatprep.subr.bf16.mxu0 %v397_v2  ;;  %v49_v3 = vsel %vm47_vm0, %v42_v1, 0  ;;  %341 = vmatprep.subr.bf16.mxu1 %v397_v2  ;;  %v368_v4 = vld [vmem:[%s498_s2] sm:$0xff]   ;;  %vm97_vm3 = vcmask 130048  }
   0x5   :  { %v38_v5 = vld [vmem:[%s497_s1] sm:$0xff]  ;;  %336 = vmatpush3.bf16.msra.mxu0 %v49_v3  ;;  %337 = vmatprep.mubr.msk.bf16.mxu0 %vm398_vm1, %v397_v2 }
   0x6   :  { %v39_v6 = vpack.c.bf16 %v38_v5, %v38_v5  ;;  %v36_v7 = vld [vmem:[%s496_s0] sm:$0xff]  ;;  %342 = vmatpush3.bf16.msra.mxu1 %v368_v4  ;;  %343 = vmatprep.mubr.msk.bf16.mxu1 %vm398_vm1, %v397_v2 }
   0x7   :  { %v37_v8 = vpack.c.bf16 %v36_v7, %v36_v7  ;;  %347 = vmatprep.subr.bf16.mxu0 %v397_v2  ;;  %355 = vmatprep.subr.bf16.mxu1 %v397_v2 }
   0x8   :  { %338 = vmatmul.mubr.msk.bf16.vlgmr.msra.gmra.mrb[0].mxu0 %vm43_vm2, %v39_v6 }
   0x9   :  { %16 = vsyncpa [#allocation4], 0  ;;  %344 = vmatmul.mubr.msk.bf16.vlgmr.msra.gmra.mrb[0].mxu1 %vm97_vm3, %v37_v8  ;;  %351 = vmatprep.mubr.msk.bf16.mxu0 %vm398_vm1, %v397_v2  ;;  %v369_v9 = vld [vmem:[%s501_s5] sm:$0xff]   ;;  %v370_v10 = vld [vmem:[%s501_s5 + $0x8] sm:$0xff]   ;;  %vm174_vm4 = vcmask 261120   ;;  %v399_v34 = vmov 0   ;;  %v290_v41 = vlaneseq }
   0xa   :  { %359 = vmatprep.mubr.msk.bf16.mxu1 %vm398_vm1, %v397_v2  ;;  %348 = vmatpush3.bf16.msra.mxu0 %v369_v9  ;;  %v371_v11 = vld [vmem:[%s503_s7] sm:$0xff]   ;;  %v372_v25 = vld [vmem:[%s503_s7 + $0x8] sm:$0xff]   ;;  %vm297_vm5 = vcmask 57344  }
   0xb   :  { %349 = vmatprep.subr.bf16.mxu0 %v397_v2  ;;  %356 = vmatpush3.bf16.msra.mxu1 %v371_v11  ;;  %v316_v15 = vld [vmem:[%s500_s4] ss:$0 sm:$0xff]  ;;  %v291_v42 = vand.u32 127, %v290_v41  ;;  %v293_v43 = vshrl.u32 %v290_v41, 7  ;;  %s400_s4 = smov [#allocation3]  }
   0xc   :  { %357 = vmatprep.subr.bf16.mxu1 %v397_v2  ;;  %v317_v26 = vld [vmem:[%s502_s6] ss:$0 sm:$0xff]  ;;  %367 = vset.pattern.permute.xlu0 %v399_v34  ;;  %s305_s6 = sshll.u32 %s400_s4, 4  ;;  %s306_s6 = int_to_ptr.vmem [resolvable:$true] %s305_s6 }
   0xd   :  { %v321_v35 = vld [vmem:[#allocation2] ss:$0 sm:$0xff]  ;;  %v294_v44 = vsub.s32 %v291_v42, %v293_v43  ;;  %s373_s7 = scalar_lea.vmem %s306_s6, 16  ;;  %s377_s25 = scalar_lea.vmem %s306_s6, 32 }
   0xe   :  { %350 = vmatpush3.bf16.msra.mxu0 %v370_v10  ;;  %p374_p0 = scmp.ne.s32.totalorder %s306_s6, %s373_s7  ;;  %p378_p1 = scmp.lt.s32.totalorder %s306_s6, %s306_s6 }
   0xf   :  { %358 = vmatpush3.bf16.msra.mxu1 %v372_v25  ;;  %p379_p2 = scmp.lt.s32.totalorder %s377_s25, %s373_s7 }
  0x11   :  { %p380_p3 = por %p379_p2, %p378_p1 }
  0x13   :  { %p381_p4 = pnand %p380_p3, %p374_p0 }
  0xdb   :  { %v85_v12 = vpop.f32.mrb[0].mxu0 }
  0xdc   :  { %v339_v13 = vpop.f32.mrb[1].mxu0  ;;  %v135_v14 = vpop.f32.mrb[0].mxu1 }
  0xdd   :  { %v136_v16 = vadd.f32 %v135_v14, %v85_v12  ;;  %v88_v17 = vpop.f32.mrb[2].mxu0  ;;  %v345_v18 = vpop.f32.mrb[1].mxu1 }
  0xde   :  { %v340_v19 = vpop.f32.mrb[3].mxu0  ;;  %v138_v20 = vpop.f32.mrb[2].mxu1 }
  0xdf   :  { %v148_v21 = vadd.f32 %v316_v15, %v136_v16  ;;  %v346_v22 = vpop.f32.mrb[3].mxu1 }
  0xe1   :  { %v149_v23 = vmax.f32 %v148_v21, 0.0 }
  0xe3   :  { %v150_v24 = vpack.c.bf16 %v149_v23, %v149_v23 }
  0xe5   :  { %352 = vmatmul.mubr.msk.bf16.vlgmr.msra.gmra.mrb[4].mxu0 %vm174_vm4, %v150_v24 }
 0x1b8   :  { %v212_v27 = vpop.f32.mrb[4].mxu0 }
 0x1b9   :  { %v213_v28 = vadd.f32 %v317_v26, %v212_v27  ;;  %v353_v29 = vpop.f32.mrb[5].mxu0 }
 0x1ba   :  { %v215_v30 = vpop.f32.mrb[6].mxu0 }
 0x1bb   :  { %v218_v31 = vmax.f32 %v213_v28, 0.0  ;;  %v354_v32 = vpop.f32.mrb[7].mxu0 }
 0x1bd   :  { %v219_v33 = vpack.c.bf16 %v218_v31, %v218_v31 }
 0x1bf   :  { %360 = vmatmul.mubr.msk.bf16.vlgmr.msra.gmra.mrb[4].mxu1 %vm174_vm4, %v219_v33 }
 0x292   :  { %v280_v36 = vpop.f32.mrb[4].mxu1 }
 0x293   :  { %v281_v37 = vadd.f32 %v321_v35, %v280_v36  ;;  %v361_v38 = vpop.f32.mrb[5].mxu1 }
 0x294   :  { %v283_v39 = vpop.f32.mrb[6].mxu1 }
 0x295   :  { %288 = vperm.xlu0 %367, %v281_v37   ;;  %v362_v40 = vpop.f32.mrb[7].mxu1 }
 0x314   :  { %v289_v45 = vpop.permute.xlu0 %288 }
 0x315   :  { %v295_v46 = vrot.slane %v289_v45, %v294_v44 }
 0x317   :  { %298 = vst.msk [vmem:[#allocation3] sm:$0x1] %vm297_vm5, %v295_v46 }
 0x318   :  { %384 = shalt.err (!%p381_p4)
}
 0x319   :  { %s385_s28 = scalar_lea.hbm %s505_s9, 16 }
 0x31a   :  { %p386_p5 = scmp.ne.s32.totalorder %s505_s9, %s385_s28  ;;  %p389_p6 = scmp.lt.u32.totalorder %s385_s28, %s505_s9 }
 0x31c   :  { %p391_p7 = pnand %p389_p6, %p386_p5 }
 0x31e   :  { %394 = shalt.err (!%p391_p7)
}
 0x31f   :  { %308 = dma.vmem_to_hbm [thread:$0]  %s306_s6, 16, %s505_s9, [#allocation4]  }
 0x320   :  { %395 = dma.done.wait [#allocation4], 16  }
 0x321   :  { %396 = vsyncadd [#allocation4], 4294967280 }
 0x322   :  { %312 = vsyncpa [#allocation4], 1 }

</bundles_post_ra>
